<compile_context>
chip_gen: v6e
topology: v6e:2x2x1
jax: 0.10.0
libtpu: 0.0.40
codegen_flags: <defaults>
</compile_context>

<pallas_src>
import jax
import jax.numpy as jnp
from jax import lax
from jax.experimental import pallas as pl
from jax.experimental.pallas import tpu as pltpu


# ---------------------------------------------------------------------------
# Primary kernel: auto-pipelined ragged copy via pl.BoundedSlice.
# ---------------------------------------------------------------------------
def _fullpair_kernel(ptr_ref, cnt_ref, x_ref, dense_ref):
    # ptr_ref  : (B,) int32 SMEM  start row of graph b in flat x
    # cnt_ref  : (B,) int32 SMEM  number of valid (<= Nmax) nodes of graph b
    # x_ref    : (Nmax, F) VMEM   ragged input block: rows [0, cnt) hold graph
    #                             b's node features (auto-pipelined copy of
    #                             x[ptr[b] : ptr[b]+cnt[b]]); rows >= cnt are
    #                             stale and must be masked.
    # dense_ref: (1, Nmax, F) VMEM dense per-graph node features (output).
    b = pl.program_id(0)
    cnt = cnt_ref[b]
    nmax = dense_ref.shape[1]
    # (Nmax, 1) row-validity mask; the select broadcasts across lanes.
    row_ids = lax.broadcasted_iota(jnp.int32, (nmax, 1), 0)
    dense_ref[0] = jnp.where(row_ids < cnt, x_ref[...], 0).astype(dense_ref.dtype)


def _dense_bounded_slice(x, starts, counts, B, Nmax, F):
    grid_spec = pltpu.PrefetchScalarGridSpec(
        num_scalar_prefetch=2,                    # starts, counts -> SMEM
        grid=(B,),
        in_specs=[pl.BlockSpec(
            (pl.BoundedSlice(Nmax), F),
            lambda b, ptr, cnt: (pl.ds(ptr[b], cnt[b]), 0))],
        out_specs=pl.BlockSpec((1, Nmax, F), lambda b, ptr, cnt: (b, 0, 0)),
    )
    return pl.pallas_call(
        _fullpair_kernel,
        out_shape=jax.ShapeDtypeStruct((B, Nmax, F), x.dtype),
        grid_spec=grid_spec,
        compiler_params=pltpu.CompilerParams(
            dimension_semantics=("parallel",),    # shard B over v7x's 2 TCs
            vmem_limit_bytes=32 * 1024 * 1024,    # safe on v5e/v6e/v7x
        ),
    )(starts, counts, x)


# ---------------------------------------------------------------------------
# Fallback kernel (older Pallas without BoundedSlice): manual fixed-window DMA
# landing directly in the output tile (no xbuf staging buffer), padded x.
# ---------------------------------------------------------------------------
def _fullpair_kernel_manual(ptr_ref, cnt_ref, x_hbm, dense_ref, sem):
    b = pl.program_id(0)
    start = ptr_ref[b]
    cnt = cnt_ref[b]
    _, nmax, f = dense_ref.shape
    # Contiguous-row copy of this graph's window straight into the output tile.
    cp = pltpu.make_async_copy(x_hbm.at[pl.ds(start, nmax), :],
                               dense_ref.at[0], sem)
    cp.start()
    cp.wait()
    # Zero-fill the padded tail (rows >= cnt belong to the next graph / pad).
    row_ids = lax.broadcasted_iota(jnp.int32, (nmax, 1), 0)
    dense_ref[0] = jnp.where(row_ids < cnt, dense_ref[0], 0).astype(dense_ref.dtype)


def _dense_manual(x, starts, counts, B, Nmax, F):
    # Pad x by Nmax rows so every fixed (Nmax-row) DMA window is in-bounds.
    x_pad = jnp.pad(x, ((0, Nmax), (0, 0)))
    grid_spec = pltpu.PrefetchScalarGridSpec(
        num_scalar_prefetch=2,
        grid=(B,),
        in_specs=[pl.BlockSpec(memory_space=pl.ANY)],   # x stays in HBM
        out_specs=pl.BlockSpec((1, Nmax, F), lambda b, ptr, cnt: (b, 0, 0)),
        scratch_shapes=[pltpu.SemaphoreType.DMA(())],
    )
    return pl.pallas_call(
        _fullpair_kernel_manual,
        out_shape=jax.ShapeDtypeStruct((B, Nmax, F), x.dtype),
        grid_spec=grid_spec,
        compiler_params=pltpu.CompilerParams(
            dimension_semantics=("parallel",),
            vmem_limit_bytes=32 * 1024 * 1024,
        ),
    )(starts, counts, x_pad)


# ---------------------------------------------------------------------------
# Wrapper (the module's forward).
# ---------------------------------------------------------------------------
def fullpair_forward(x, counts, *, batch_size, max_num_nodes,
                     materialize_expanded_mask=True):
    """Returns (dense_x [B, Nmax, F], attn_mask [B, 1, Nmax, Nmax] bool)."""
    Ntot, F = x.shape
    B, Nmax = int(batch_size), int(max_num_nodes)
    counts = counts.astype(jnp.int32)

    # to_dense_batch truncates graphs longer than max_num_nodes; clamping also
    # guarantees every ragged copy is in-bounds (ptr[b] + cnt[b] <= Ntot).
    counts_c = jnp.minimum(counts, Nmax)

    # Start row of each graph's contiguous range in x.
    # NOTE / TODO(synk): assumes the batch vector is sorted so each graph's
    # rows are contiguous in x (same assumption PyG's `ptr` encodes); an
    # unsorted batch would need a scatter instead.
    starts = jnp.concatenate(
        [jnp.zeros((1,), jnp.int32), jnp.cumsum(counts)[:-1].astype(jnp.int32)])

    dense = None
    if hasattr(pl, "BoundedSlice"):
        try:
            dense = _dense_bounded_slice(x, starts, counts_c, B, Nmax, F)
        except Exception:
            dense = None   # fall back to the manual-DMA path below
    if dense is None:
        dense = _dense_manual(x, starts, counts_c, B, Nmax, F)

    # Compact key-validity mask: only B*Nmax elements, free in XLA — no int32
    # HBM write / re-read round trip through the kernel.
    key_mask = jnp.arange(Nmax, dtype=jnp.int32)[None, :] < counts_c[:, None]

    if materialize_expanded_mask:
        # JAX analogue of torch's zero-copy .expand over the query axis.
        # TODO(synk): if the downstream attention kernel can consume the
        # compact (B, Nmax) key mask directly, skip this O(B*Nmax^2) write.
        attn_mask = jnp.broadcast_to(key_mask[:, None, None, :],
                                     (B, 1, Nmax, Nmax))
    else:
        attn_mask = key_mask

    # TODO(synk): the PyG batch-object mutation and Dmask/Gindex caching across
    # calls is Python-side module state with no Pallas equivalent; only the
    # numeric forward (to_dense_batch + mask expansion) is implemented.
    return dense, attn_mask


if __name__ == "__main__":
    key = jax.random.PRNGKey(0)

    # Small synthetic "batch": 2 graphs with 5 and 8 nodes, hidden dim 32.
    B = 2
    counts = jnp.array([5, 8], dtype=jnp.int32)       # nodes per graph
    Nmax = int(counts.max())                          # max_num_nodes = 8
    Ntot = int(counts.sum())                          # 13 flat nodes
    F = 32                                            # cfg.gt.dim_hidden

    x = jax.random.normal(key, (Ntot, F), dtype=jnp.float32)

    dense, attn_mask = fullpair_forward(
        x, counts, batch_size=B, max_num_nodes=Nmax)
    dense, attn_mask = jax.block_until_ready((dense, attn_mask))

    # Pure-JAX reference (to_dense_batch + mask expand semantics).
    batch_vec = jnp.repeat(jnp.arange(B, dtype=jnp.int32), counts,
                           total_repeat_length=Ntot)  # graph id per node
    ptr = jnp.concatenate([jnp.zeros((1,), jnp.int32),
                           jnp.cumsum(counts).astype(jnp.int32)])
    pos = jnp.arange(Ntot, dtype=jnp.int32) - ptr[batch_vec]
    gindex = batch_vec * Nmax + pos
    dense_expected = (jnp.zeros((B * Nmax, F), x.dtype)
                      .at[gindex].set(x).reshape(B, Nmax, F))
    dmask_expected = jnp.arange(Nmax)[None, :] < counts[:, None]
    mask_expected = jnp.broadcast_to(dmask_expected[:, None, None, :],
                                     (B, 1, Nmax, Nmax))

    assert dense.shape == (B, Nmax, F) and dense.dtype == x.dtype
    assert attn_mask.shape == (B, 1, Nmax, Nmax) and attn_mask.dtype == jnp.bool_
    assert jnp.allclose(dense, dense_expected, atol=1e-6)
    assert bool(jnp.array_equal(attn_mask, mask_expected))
    print("KERNEL_OK")
</pallas_src>

<mosaic_0001>
module attributes {stable_mosaic.version = 11 : i64} {
  func.func @_fullpair_kernel_manual(%arg0: i32, %arg1: memref<2xi32, #tpu.memory_space<smem>>, %arg2: memref<2xi32, #tpu.memory_space<smem>>, %arg3: memref<21x32xf32, #tpu.memory_space<any>>, %arg4: memref<1x8x32xf32, #tpu.memory_space<vmem>>, %arg5: memref<!tpu.dma_semaphore, #tpu.memory_space<semaphore_mem>>) attributes {dimension_semantics = [#tpu.dimension_semantics<parallel>], iteration_bounds = array<i64: 2>, scalar_prefetch = 2 : i64, scratch_operands = 1 : i64, tpu.core_type = #tpu.core_type<tc>, window_params = [{}, {transform_indices = @transform_1, window_bounds = array<i64: 1, 8, 32>}]} {
    %0 = arith.index_cast %arg0 : i32 to index
    %1 = memref.load %arg1[%0] : memref<2xi32, #tpu.memory_space<smem>>
    %2 = arith.index_cast %arg0 : i32 to index
    %3 = memref.load %arg2[%2] : memref<2xi32, #tpu.memory_space<smem>>
    %c0_i32 = arith.constant 0 : i32
    %c0_i32_0 = arith.constant 0 : i32
    %4 = tpu.memref_slice %arg3[%1, %c0_i32_0] : memref<21x32xf32, #tpu.memory_space<any>> -> memref<8x32xf32, #tpu.memory_space<any>>
    %c0_i32_1 = arith.constant 0 : i32
    %c0_i32_2 = arith.constant 0 : i32
    %5 = tpu.memref_slice %arg4[%c0_i32, %c0_i32_1, %c0_i32_2] : memref<1x8x32xf32, #tpu.memory_space<vmem>> -> memref<1x8x32xf32, #tpu.memory_space<vmem>>
    %6 = tpu.memref_squeeze %5 : memref<1x8x32xf32, #tpu.memory_space<vmem>> -> memref<8x32xf32, #tpu.memory_space<vmem>>
    tpu.enqueue_dma source(%4 : memref<8x32xf32, #tpu.memory_space<any>>) target(%6 : memref<8x32xf32, #tpu.memory_space<vmem>>) target_semaphore(%arg5 : memref<!tpu.dma_semaphore, #tpu.memory_space<semaphore_mem>>)
    %c0_i32_3 = arith.constant 0 : i32
    %c0_i32_4 = arith.constant 0 : i32
    %7 = tpu.memref_slice %arg3[%1, %c0_i32_4] : memref<21x32xf32, #tpu.memory_space<any>> -> memref<8x32xf32, #tpu.memory_space<any>>
    %c0_i32_5 = arith.constant 0 : i32
    %c0_i32_6 = arith.constant 0 : i32
    %8 = tpu.memref_slice %arg4[%c0_i32_3, %c0_i32_5, %c0_i32_6] : memref<1x8x32xf32, #tpu.memory_space<vmem>> -> memref<1x8x32xf32, #tpu.memory_space<vmem>>
    %9 = tpu.memref_squeeze %8 : memref<1x8x32xf32, #tpu.memory_space<vmem>> -> memref<8x32xf32, #tpu.memory_space<vmem>>
    tpu.wait_dma2 semaphore(%arg5 : memref<!tpu.dma_semaphore, #tpu.memory_space<semaphore_mem>>) src(%7 : memref<8x32xf32, #tpu.memory_space<any>>) dst(%9 : memref<8x32xf32, #tpu.memory_space<vmem>>)
    %10 = tpu.iota {dimensions = array<i32: 0>} : vector<8x1xi32>
    %11 = vector.broadcast %3 : i32 to vector<8x1xi32>
    %12 = arith.cmpi slt, %10, %11 : vector<8x1xi32>
    %c0 = arith.constant 0 : index
    %c0_7 = arith.constant 0 : index
    %c0_8 = arith.constant 0 : index
    %13 = vector.load %arg4[%c0, %c0_7, %c0_8] : memref<1x8x32xf32, #tpu.memory_space<vmem>>, vector<1x8x32xf32>
    %14 = vector.shape_cast %13 : vector<1x8x32xf32> to vector<8x32xf32>
    %c0_i32_9 = arith.constant 0 : i32
    %15 = arith.sitofp %c0_i32_9 : i32 to f32
    %16 = vector.shape_cast %12 : vector<8x1xi1> to vector<8x1xi1>
    %17 = vector.broadcast %16 : vector<8x1xi1> to vector<8x32xi1>
    %18 = vector.broadcast %15 : f32 to vector<8x32xf32>
    %19 = arith.select %17, %14, %18 : vector<8x32xi1>, vector<8x32xf32>
    %c0_10 = arith.constant 0 : index
    %c0_11 = arith.constant 0 : index
    %c0_12 = arith.constant 0 : index
    %20 = vector.load %arg4[%c0_10, %c0_11, %c0_12] : memref<1x8x32xf32, #tpu.memory_space<vmem>>, vector<1x8x32xf32>
    %21 = vector.shape_cast %20 : vector<1x8x32xf32> to vector<8x32xf32>
    %22 = vector.shape_cast %19 : vector<8x32xf32> to vector<1x8x32xf32>
    tpu.vector_store %arg4[%c0_10, %c0_11, %c0_12], %22 {strides = array<i32>} : memref<1x8x32xf32, #tpu.memory_space<vmem>>, vector<1x8x32xf32>,
    return
  }
  func.func @transform_1(%arg0: i32, %arg1: memref<2xi32, #tpu.memory_space<smem>>, %arg2: memref<2xi32, #tpu.memory_space<smem>>) -> (i32, i32, i32) {
    %c0_i32 = arith.constant 0 : i32
    %c0_i32_0 = arith.constant 0 : i32
    %c0_i32_1 = arith.constant 0 : i32
    return %arg0, %c0_i32, %c0_i32_0 : i32, i32, i32
  }
}

</mosaic_0001>

<bundles_post_ra>
// kernel: tpu_custom_call.1
= control target key start
LH: loop header
LB: loop body
LE: loop exit
PB: predicated region body
PF: predicated region fallthrough
CT: control target
= control target key end

     0   :  { %s293_s12 = smov [#allocation4]   ;;  %s450_s0 = inlined_call_operand.hbm [shape: s32[2], index: 0, kind: input, shape index: {}]   ;;  %s451_s2 = inlined_call_operand.hbm [shape: f32[21,32], index: 2, kind: input, shape index: {}]   ;;  %s452_s3 = inlined_call_operand.hbm [shape: f32[2,8,32], index: 3, kind: output, shape index: {}]   ;;  %s453_s1 = inlined_call_operand.vmem [shape: s32[2], index: 1, kind: input, shape index: {}]  }
   0x1   :  { %9 = dma.hbm_to_smem %s450_s0, 16, %s293_s12, [#allocation3] }
   0x2   :  { %s10_s17 = sshll.u32 %s453_s1, 4  ;;  %s11_s17 = int_to_ptr.vmem [resolvable:$true] %s10_s17 }
   0x3   :  { %s201_s18 = scalar_lea.vmem %s11_s17, 16  ;;  %p206_p1 = scmp.lt.s32.totalorder %s11_s17, %s11_s17 }
   0x4   :  { %p202_p0 = scmp.ne.s32.totalorder %s11_s17, %s201_s18  ;;  %p207_p2 = scmp.lt.s32.totalorder %s201_s18, %s201_s18 }
   0x6   :  { %p208_p3 = por %p207_p2, %p206_p1 }
   0x8   :  { %p209_p4 = pnand %p208_p3, %p202_p0 }
   0xa   :  { %212 = shalt.err (!%p209_p4)  }
   0xb   :  { %s294_s19 = smov [#allocation5]  }
   0xc   :  { %13 = dma.vmem_to_smem %s11_s17, 16, %s294_s19, [#allocation3] }
   0xd   :  { %273 = dma.done.wait [#allocation3], 32 }
   0xe   :  { %274 = vsyncadd [#allocation3], 4294967264 }
   0xf   :  { %15 = sfence }
  0x10   :  { %16 = vsyncpa [#allocation7], 0 }
  0x11   :  { %18 = vsyncpa [#allocation7 + $0x1], 0  ;;  %s322_s0 = smov 0   ;;  %s324_s20 = smov 0  }
  0x12   :  { %s326_s1 = smov 0  }
  0x13 LB: > { %s150_s21 = sadd.s32 4294967295, %s291_s1   ;;  %s339_s22 = sadd.s32 1, %s291_s1   ;;  %s291_s1 = sphi %s326_s1, %s461_s1   ;;  %s287_s20 = sphi %s324_s20, %s460_s20   ;;  %s283_s0 = sphi %s322_s0, %s459_s0  }
  0x14   : > { %s27_s23 = ssub.s32 %s291_s1, %s339_s22  ;;  %s30_s24 = sadd.s32 1, %s287_s20 }
  0x15   : > { %p28_p5 = scmp.eq.s32.totalorder %s27_s23, 0  ;;  %p151_p6 = scmp.ne.s32.totalorder %s27_s23, 0 }
  0x16   : > { %p34_p7 = scmp.eq.s32.totalorder %s291_s1, 1  ;;  %p39_p8 = scmp.ne.s32.totalorder %s287_s20, %s283_s0 }
  0x17   : > { %s348_s25 = scalar_select %p28_p5, %s287_s20, %s30_s24  }
  0x18   : > { %p350_p9 = por %p151_p6, %p34_p7  ;;  %p40_p10 = scmp.eq.s32.totalorder %s150_s21, 1 }
  0x19   : > { %p152_p12 = scmp.ge.s32.totalorder %s291_s1, 2 }
  0x1a   : > { %p354_p11 = por %p40_p10, %p39_p8  ;;  %s54_s28 = sand.u32 (!%p152_p12), 1, %s287_s20  }
  0x1b   : > { %49 = sbr.rel (%p152_p12) target bundleno = 74 (0x4a), region = 12  ;;  %s57_s29 = sld [smem:[#allocation4 + %s291_s1]] (!%p152_p12) }
  0x1c   : > { %s153_s30 = sshll.u32 (!%p152_p12), %s54_s28, 3  ;;  %s364_s4 = sld [smem:[#allocation5 + %s291_s1]] (!%p152_p12) }
  0x1d   : > { %s366_s5 = scalar_lea.vmem (!%p152_p12), [#allocation6], %s153_s30  ;;  %s215_s14 = scalar_lea.hbm (!%p152_p12), %s451_s2, 384 }
  0x1e   : > { %s68_s6 = sshll.u32 (!%p152_p12), %s366_s5, 4  ;;  %s369_s6 = int_to_ptr.vmem [resolvable:$true] %s68_s6 }
  0x21   : > { %s154_s7 = sshll.u32 %s57_s29, 4 }
  0x22   : > { %s60_s10 = scalar_lea.hbm %s451_s2, %s154_s7 }
  0x23   : > { %s213_s11 = scalar_lea.hbm %s60_s10, 128  ;;  %p216_p0 = scmp.lt.s32.totalorder %s60_s10, %s451_s2 }
  0x24   : > { %p214_p13 = scmp.ne.s32.totalorder %s60_s10, %s213_s11  ;;  %p217_p1 = scmp.lt.s32.totalorder %s215_s14, %s213_s11 }
  0x26   : > { %p218_p2 = por %p217_p1, %p216_p0 }
  0x28   : > { %p219_p3 = pnand %p218_p2, %p214_p13 }
  0x2a   : > { %222 = shalt.err (!%p219_p3)  }
  0x2b   : > { %s223_s17 = scalar_lea.vmem %s369_s6, 128  ;;  %s295_s19 = smov [#allocation6]  }
  0x2c   : > { %p382_p4 = scmp.ne.s32.totalorder %s369_s6, %s223_s17  ;;  %s225_s21 = sshll.u32 %s295_s19, 4  ;;  %s226_s21 = int_to_ptr.vmem [resolvable:$false] %s225_s21 }
  0x2d   : > { %s227_s23 = scalar_lea.vmem %s226_s21, 256  ;;  %p387_p5 = scmp.lt.s32.totalorder %s369_s6, %s226_s21 }
  0x2e   : > { %p391_p6 = scmp.lt.s32.totalorder %s227_s23, %s223_s17 }
  0x30   : > { %p230_p7 = por %p391_p6, %p387_p5 }
  0x32   : > { %p231_p8 = pnand %p230_p7, %p382_p4 }
  0x34   : > { %234 = shalt.err (!%p231_p8)  }
  0x35   : > { %71 = dma.hbm_to_vmem [thread:$0]  %s60_s10, 128, %s369_s6, [#allocation2] }
  0x36   : > { %275 = dma.done.wait [#allocation2], 128 }
  0x37   : > { %276 = vsyncadd [#allocation2], 4294967168  ;;  %v75_v0 = vlaneseq  ;;  %v77_v2 = vstv %s364_s4  ;;  %s156_s30 = sshll.u32 %s291_s1, 7  ;;  %vm83_vm1 = vcmask 261120   ;;  %v79_v3 = vld [vmem:[%s366_s5] sm:$0xff]  ;;  %s86_s10 = scalar_lea.sflag [#allocation7], %s54_s28 }
  0x38   : > { %s97_s9 = scalar_lea.hbm %s452_s3, %s156_s30  ;;  %p237_p10 = pnand %p382_p4, %p350_p9 }
  0x39   : > { %v76_v1 = vshrl.u32 %v75_v0, 7 }
  0x3a   : > { %p238_p12 = pneg %p237_p10 }
  0x3b   : > { %vm78_vm0 = vcmp.lt.s32.totalorder %v76_v1, %v77_v2 }
  0x3c   : > { %v82_v4 = vsel %vm78_vm0, %v79_v3, 0.0  ;;  %p245_p13 = pnand %p238_p12, %p230_p7 }
  0x3d   : > { %84 = vst.msk [vmem:[%s366_s5] sm:$0xff] %vm83_vm1, %v82_v4 }
  0x3e   : > { %248 = shalt.err (!%p245_p13)
}
  0x3f   : > { %s249_s4 = scalar_lea.hbm %s97_s9, 128  ;;  %s253_s5 = scalar_lea.hbm %s452_s3, 256 }
  0x40   : > { %p250_p0 = scmp.ne.s32.totalorder %s97_s9, %s249_s4  ;;  %p254_p3 = scmp.lt.s32.totalorder %s97_s9, %s452_s3 }
  0x41   : > { %p255_p4 = scmp.lt.s32.totalorder %s253_s5, %s249_s4 }
  0x42   : > { %p251_p1 = pnand %p250_p0, %p350_p9 }
  0x43   : > { %p256_p8 = por %p255_p4, %p254_p3 }
  0x44   : > { %p252_p2 = pneg %p251_p1 }
  0x46   : > { %p257_p10 = pnand %p256_p8, %p252_p2 }
  0x48   : > { %260 = shalt.err (!%p257_p10)
}
  0x49   : > { %160 = dma.vmem_to_hbm [thread:$0]  (%p350_p9), %s369_s6, 128, %s97_s9, %s86_s10  }
  0x4a PF: > { %p166_p5 = scmp.ge.s32.totalorder %s291_s1, 1  ;;  %s111_s14 = sand.u32 1, %s283_s0  }
  0x4b   : > { %s112_s15 = scalar_lea.sflag [#allocation7], %s111_s14 }
  0x4c   : > { %p163_p6 = pnand %p166_p5, %p354_p11 }
  0x4e   : > { %p164_p7 = pneg %p163_p6 }
  0x50   : > { %278 = dma.done.wait (%p164_p7), %s112_s15, 128  }
  0x51   : > { %280 = vsyncadd (%p164_p7), %s112_s15, 4294967168  ;;  %p21_p12 = scmp.ge.s32.totalorder %s339_s22, 3   ;;  %s459_s0 = smov %s287_s20 }
  0x52   : > { %s460_s20 = smov %s348_s25  ;;  %s461_s1 = smov %s339_s22 }
  0x53   :  { %23 = sbr.rel (!%p21_p12) target bundleno = 19 (0x13), region = 49 }
  0x58   :  { %117 = vsyncpa [#allocation7], 1 }
  0x59   :  { %119 = vsyncpa [#allocation7 + $0x1], 1 }
  0x5a   :  { %120 = vsyncmov [#allocation2] }
  0x5d   :  { %s121_s1 = vpop.sfrf %120 }
  0x5e   :  { %p159_p9 = scmp.ne.s32.totalorder %s121_s1, 0 }
  0x60   :  { %125 = shalt.err (%p159_p9)  }

</bundles_post_ra>
